<compile_context>
chip_gen: v7x
topology: tpu7x:2x2x1
jax: 0.10.0
libtpu: 0.0.40
codegen_flags: <defaults>
</compile_context>

<pallas_src>
import functools

import numpy as np

import jax
import jax.numpy as jnp
from jax.experimental import pallas as pl
from jax.experimental.pallas import tpu as pltpu

OUT_H = 320
OUT_W = 320
NB_MAX = 8            # batch images per grid step (VMEM: ~6.5 MiB out blocks at NB=8)


# ---------------- interpolation matrix (PyTorch align_corners=False), host-side ----------------

@functools.lru_cache(maxsize=None)
def _bilinear_matrix_np(in_size, out_size):
    """(out_size, in_size) matrix M with (M @ x) == 1-D bilinear resize of x using
    PyTorch's align_corners=False (half-pixel) convention.  Built with numpy so it
    becomes a folded constant instead of per-call scatter-add HLOs."""
    scale = in_size / out_size
    j = np.arange(out_size)
    src = np.maximum(scale * (j.astype(np.float32) + 0.5) - 0.5, 0.0)
    i0 = np.clip(np.floor(src).astype(np.int32), 0, in_size - 1)
    i1 = np.minimum(i0 + 1, in_size - 1)
    frac = (src - i0.astype(np.float32)).astype(np.float32)
    a = np.zeros((out_size, in_size), np.float32)
    np.add.at(a, (j, i0), (1.0 - frac).astype(np.float32))
    np.add.at(a, (j, i1), frac)
    return a


# ---------------- fused Pallas kernel ----------------

def _decoder_kernel(w_ref, b_ref, x_ref, awt_ref, ah_ref, o_ref):
    # w_ref:   SMEM (C,)                 conv 1x1 weights
    # b_ref:   SMEM (1,)                 conv bias
    # x_ref:   VMEM (NB, C, H, W)        batch block of the NCHW input
    # awt_ref: VMEM (W, OUT_W)           column-interpolation matrix (transposed)
    # ah_ref:  VMEM (ROW_BLK, H)         row-interpolation matrix block
    # o_ref:   VMEM (NB, ROW_BLK, OUT_W)
    nb, c, h, w = x_ref.shape
    x = x_ref[...]

    # 1x1 conv over channels on the VPU (C is tiny -> unrolled scalar-broadcast MAC),
    # then sigmoid, over the whole batch block at once.
    t = x[:, 0] * w_ref[0]
    for ch in range(1, c):
        t = t + x[:, ch] * w_ref[ch]
    t = jax.nn.sigmoid(t + b_ref[0])                       # (NB, H, W)

    awt = awt_ref[...]                                     # (W, OUT_W)
    ah = ah_ref[...]                                       # (ROW_BLK, H)

    # Column interpolation FIRST so the intermediate is lane-dense (H, OUT_W),
    # then row interpolation.  Per-image matmuls: MXU shape efficiency is not
    # the bottleneck here (overhead / HBM-writeback bound) and this avoids any
    # relayout of the (NB, H, W) slab.
    for i in range(nb):
        g = jnp.dot(t[i], awt, preferred_element_type=jnp.float32)      # (H, OUT_W)
        o_ref[i] = jnp.dot(ah, g, preferred_element_type=jnp.float32)   # (ROW_BLK, OUT_W)


# ---------------- wrapper ----------------

@functools.partial(jax.jit, static_argnames=("out_h", "out_w"))
def decoder_forward(x, w, b, out_h=OUT_H, out_w=OUT_W):
    """x: (N, C, H, W) f32, w: (C,) f32, b: (1,) f32 -> (N, 1, out_h, out_w) f32."""
    n, c, h, wd = x.shape

    # Host-built constant interpolation matrices (fold into the executable).
    a_h = _bilinear_matrix_np(h, out_h)                      # (out_h, h)
    a_wt = np.ascontiguousarray(_bilinear_matrix_np(wd, out_w).T)   # (wd, out_w)

    # Batch blocking: NB images per grid step to amortize per-step overhead.
    nb = min(n, NB_MAX)
    n_pad = pl.cdiv(n, nb) * nb
    if n_pad != n:
        x = jnp.pad(x, ((0, n_pad - n), (0, 0), (0, 0), (0, 0)))
    n_blocks = n_pad // nb

    # When there is only one batch block, split the output rows across a second
    # "parallel" grid axis so both v7x TensorCores get work (neutral on 1-TC chips).
    row_blocks = 2 if (n_blocks == 1 and out_h % 16 == 0) else 1
    row_blk = out_h // row_blocks

    out = pl.pallas_call(
        _decoder_kernel,
        out_shape=jax.ShapeDtypeStruct((n_pad, out_h, out_w), jnp.float32),
        grid=(n_blocks, row_blocks),
        in_specs=[
            pl.BlockSpec(memory_space=pltpu.MemorySpace.SMEM),            # w (C,)
            pl.BlockSpec(memory_space=pltpu.MemorySpace.SMEM),            # b (1,)
            pl.BlockSpec((nb, c, h, wd), lambda i, j: (i, 0, 0, 0)),      # x batch block
            pl.BlockSpec((wd, out_w), lambda i, j: (0, 0)),               # A_w^T (grid-constant)
            pl.BlockSpec((row_blk, h), lambda i, j: (j, 0)),              # A_h row block
        ],
        out_specs=pl.BlockSpec((nb, row_blk, out_w), lambda i, j: (i, j, 0)),
        compiler_params=pltpu.CompilerParams(
            dimension_semantics=("parallel", "parallel")),
    )(w, b, x, a_wt, a_h)

    return out[:n, None, :, :]   # (N, 1, out_h, out_w), matching the PyTorch module


# ---------------- pure-JAX reference (independent: gather-based bilinear) ----------------

def decoder_reference(x, w, b, out_h=OUT_H, out_w=OUT_W):
    n, c, h, wd = x.shape
    hid = jax.nn.sigmoid(jnp.einsum("nchw,c->nhw", x, w) + b[0])   # (N, H, W)

    def src_index(in_size, out_size):
        scale = in_size / out_size
        s = jnp.maximum(scale * (jnp.arange(out_size, dtype=jnp.float32) + 0.5) - 0.5, 0.0)
        i0 = jnp.clip(jnp.floor(s).astype(jnp.int32), 0, in_size - 1)
        i1 = jnp.minimum(i0 + 1, in_size - 1)
        f = s - i0.astype(jnp.float32)
        return i0, i1, f

    h0, h1, fh = src_index(h, out_h)
    w0, w1, fw = src_index(wd, out_w)
    g = hid[:, :, w0] * (1.0 - fw) + hid[:, :, w1] * fw                     # (N, H, out_w)
    out = g[:, h0, :] * (1.0 - fh)[:, None] + g[:, h1, :] * fh[:, None]     # (N, out_h, out_w)
    return out


if __name__ == "__main__":
    key = jax.random.PRNGKey(0)
    kx, kw, kb = jax.random.split(key, 3)

    # Small shapes matching the module: batch=2, in_channels=4, spatial 16x16.
    N, C, H, W = 2, 4, 16, 16
    x = jax.random.normal(kx, (N, C, H, W), dtype=jnp.float32)
    w = (jax.random.normal(kw, (C,), dtype=jnp.float32) / jnp.sqrt(C)).astype(jnp.float32)
    b = (0.1 * jax.random.normal(kb, (1,), dtype=jnp.float32)).astype(jnp.float32)

    out = decoder_forward(x, w, b)
    out = jax.block_until_ready(out)
    assert out.shape == (N, 1, OUT_H, OUT_W), out.shape
    ref = decoder_reference(x, w, b)
    np.testing.assert_allclose(np.asarray(out[:, 0]), np.asarray(ref), rtol=1e-5, atol=1e-5)

    # Exercise the multi-batch-block + padded-batch path as well.
    N2 = 10
    x2 = jax.random.normal(kx, (N2, C, H, W), dtype=jnp.float32)
    out2 = jax.block_until_ready(decoder_forward(x2, w, b))
    assert out2.shape == (N2, 1, OUT_H, OUT_W), out2.shape
    ref2 = decoder_reference(x2, w, b)
    np.testing.assert_allclose(np.asarray(out2[:, 0]), np.asarray(ref2), rtol=1e-5, atol=1e-5)

    print("KERNEL_OK")
</pallas_src>

<mosaic_0001>
module attributes {stable_mosaic.version = 11 : i64} {
  func.func @_decoder_kernel(%arg0: i32, %arg1: i32, %arg2: memref<4xf32, #tpu.memory_space<smem>>, %arg3: memref<1xf32, #tpu.memory_space<smem>>, %arg4: memref<2x4x16x16xf32, #tpu.memory_space<vmem>>, %arg5: memref<16x320xf32, #tpu.memory_space<vmem>>, %arg6: memref<160x16xf32, #tpu.memory_space<vmem>>, %arg7: memref<2x160x320xf32, #tpu.memory_space<vmem>>) attributes {dimension_semantics = [#tpu.dimension_semantics<parallel>, #tpu.dimension_semantics<parallel>], iteration_bounds = array<i64: 1, 2>, scalar_prefetch = 0 : i64, scratch_operands = 0 : i64, tpu.core_type = #tpu.core_type<tc>, window_params = [{transform_indices = @transform_0, window_bounds = array<i64: 4>}, {transform_indices = @transform_1, window_bounds = array<i64: 1>}, {transform_indices = @transform_2, window_bounds = array<i64: 2, 4, 16, 16>}, {pipeline_mode = #tpu.pipeline_mode<synchronous>, transform_indices = @transform_3, window_bounds = array<i64: 16, 320>}, {transform_indices = @transform_4, window_bounds = array<i64: 160, 16>}, {transform_indices = @transform_5, window_bounds = array<i64: 2, 160, 320>}]} {
    %c0 = arith.constant 0 : index
    %c0_0 = arith.constant 0 : index
    %c0_1 = arith.constant 0 : index
    %c0_2 = arith.constant 0 : index
    %0 = vector.load %arg4[%c0, %c0_0, %c0_1, %c0_2] : memref<2x4x16x16xf32, #tpu.memory_space<vmem>>, vector<2x4x16x16xf32>
    %1 = vector.extract_strided_slice %0 {offsets = [0, 0, 0, 0], sizes = [2, 1, 16, 16], strides = [1, 1, 1, 1]} : vector<2x4x16x16xf32> to vector<2x1x16x16xf32>
    %2 = vector.shape_cast %1 : vector<2x1x16x16xf32> to vector<2x16x16xf32>
    %c0_3 = arith.constant 0 : index
    %3 = memref.load %arg2[%c0_3] : memref<4xf32, #tpu.memory_space<smem>>
    %4 = vector.broadcast %3 : f32 to vector<2x16x16xf32>
    %5 = arith.mulf %2, %4 : vector<2x16x16xf32>
    %6 = vector.extract_strided_slice %0 {offsets = [0, 1, 0, 0], sizes = [2, 1, 16, 16], strides = [1, 1, 1, 1]} : vector<2x4x16x16xf32> to vector<2x1x16x16xf32>
    %7 = vector.shape_cast %6 : vector<2x1x16x16xf32> to vector<2x16x16xf32>
    %c1 = arith.constant 1 : index
    %8 = memref.load %arg2[%c1] : memref<4xf32, #tpu.memory_space<smem>>
    %9 = vector.broadcast %8 : f32 to vector<2x16x16xf32>
    %10 = arith.mulf %7, %9 : vector<2x16x16xf32>
    %11 = arith.addf %5, %10 : vector<2x16x16xf32>
    %12 = vector.extract_strided_slice %0 {offsets = [0, 2, 0, 0], sizes = [2, 1, 16, 16], strides = [1, 1, 1, 1]} : vector<2x4x16x16xf32> to vector<2x1x16x16xf32>
    %13 = vector.shape_cast %12 : vector<2x1x16x16xf32> to vector<2x16x16xf32>
    %c2 = arith.constant 2 : index
    %14 = memref.load %arg2[%c2] : memref<4xf32, #tpu.memory_space<smem>>
    %15 = vector.broadcast %14 : f32 to vector<2x16x16xf32>
    %16 = arith.mulf %13, %15 : vector<2x16x16xf32>
    %17 = arith.addf %11, %16 : vector<2x16x16xf32>
    %18 = vector.extract_strided_slice %0 {offsets = [0, 3, 0, 0], sizes = [2, 1, 16, 16], strides = [1, 1, 1, 1]} : vector<2x4x16x16xf32> to vector<2x1x16x16xf32>
    %19 = vector.shape_cast %18 : vector<2x1x16x16xf32> to vector<2x16x16xf32>
    %c3 = arith.constant 3 : index
    %20 = memref.load %arg2[%c3] : memref<4xf32, #tpu.memory_space<smem>>
    %21 = vector.broadcast %20 : f32 to vector<2x16x16xf32>
    %22 = arith.mulf %19, %21 : vector<2x16x16xf32>
    %23 = arith.addf %17, %22 : vector<2x16x16xf32>
    %c0_4 = arith.constant 0 : index
    %24 = memref.load %arg3[%c0_4] : memref<1xf32, #tpu.memory_space<smem>>
    %25 = vector.broadcast %24 : f32 to vector<2x16x16xf32>
    %26 = arith.addf %23, %25 : vector<2x16x16xf32>
    %27 = arith.negf %26 : vector<2x16x16xf32>
    %28 = math.exp %27 : vector<2x16x16xf32>
    %cst = arith.constant 1.000000e+00 : f32
    %29 = vector.broadcast %cst : f32 to vector<2x16x16xf32>
    %30 = arith.addf %29, %28 : vector<2x16x16xf32>
    %31 = arith.divf %29, %30 : vector<2x16x16xf32>
    %c0_5 = arith.constant 0 : index
    %c0_6 = arith.constant 0 : index
    %32 = vector.load %arg5[%c0_5, %c0_6] : memref<16x320xf32, #tpu.memory_space<vmem>>, vector<16x320xf32>
    %c0_7 = arith.constant 0 : index
    %c0_8 = arith.constant 0 : index
    %33 = vector.load %arg6[%c0_7, %c0_8] : memref<160x16xf32, #tpu.memory_space<vmem>>, vector<160x16xf32>
    %34 = vector.extract_strided_slice %31 {offsets = [0, 0, 0], sizes = [1, 16, 16], strides = [1, 1, 1]} : vector<2x16x16xf32> to vector<1x16x16xf32>
    %35 = vector.shape_cast %34 : vector<1x16x16xf32> to vector<16x16xf32>
    %cst_9 = arith.constant dense<0.000000e+00> : vector<16x320xf32>
    %36 = tpu.matmul %35, %32, %cst_9 {dimension_numbers = #tpu.dot_dimension_numbers<[1], [0], [0], [1], [0, 0, 1, 1], [], []>} : vector<16x16xf32>, vector<16x320xf32>, vector<16x320xf32> -> vector<16x320xf32>
    %cst_10 = arith.constant dense<0.000000e+00> : vector<160x320xf32>
    %37 = tpu.matmul %33, %36, %cst_10 {dimension_numbers = #tpu.dot_dimension_numbers<[1], [0], [0], [1], [0, 0, 1, 1], [], []>} : vector<160x16xf32>, vector<16x320xf32>, vector<160x320xf32> -> vector<160x320xf32>
    %c0_11 = arith.constant 0 : index
    %c0_12 = arith.constant 0 : index
    %c0_13 = arith.constant 0 : index
    %38 = vector.load %arg7[%c0_11, %c0_12, %c0_13] : memref<2x160x320xf32, #tpu.memory_space<vmem>>, vector<1x160x320xf32>
    %39 = vector.shape_cast %38 : vector<1x160x320xf32> to vector<160x320xf32>
    %40 = vector.shape_cast %37 : vector<160x320xf32> to vector<1x160x320xf32>
    tpu.vector_store %arg7[%c0_11, %c0_12, %c0_13], %40 {strides = array<i32>} : memref<2x160x320xf32, #tpu.memory_space<vmem>>, vector<1x160x320xf32>,
    %41 = vector.extract_strided_slice %31 {offsets = [1, 0, 0], sizes = [1, 16, 16], strides = [1, 1, 1]} : vector<2x16x16xf32> to vector<1x16x16xf32>
    %42 = vector.shape_cast %41 : vector<1x16x16xf32> to vector<16x16xf32>
    %cst_14 = arith.constant dense<0.000000e+00> : vector<16x320xf32>
    %43 = tpu.matmul %42, %32, %cst_14 {dimension_numbers = #tpu.dot_dimension_numbers<[1], [0], [0], [1], [0, 0, 1, 1], [], []>} : vector<16x16xf32>, vector<16x320xf32>, vector<16x320xf32> -> vector<16x320xf32>
    %cst_15 = arith.constant dense<0.000000e+00> : vector<160x320xf32>
    %44 = tpu.matmul %33, %43, %cst_15 {dimension_numbers = #tpu.dot_dimension_numbers<[1], [0], [0], [1], [0, 0, 1, 1], [], []>} : vector<160x16xf32>, vector<16x320xf32>, vector<160x320xf32> -> vector<160x320xf32>
    %c1_16 = arith.constant 1 : index
    %c0_17 = arith.constant 0 : index
    %c0_18 = arith.constant 0 : index
    %45 = vector.load %arg7[%c1_16, %c0_17, %c0_18] : memref<2x160x320xf32, #tpu.memory_space<vmem>>, vector<1x160x320xf32>
    %46 = vector.shape_cast %45 : vector<1x160x320xf32> to vector<160x320xf32>
    %47 = vector.shape_cast %44 : vector<160x320xf32> to vector<1x160x320xf32>
    tpu.vector_store %arg7[%c1_16, %c0_17, %c0_18], %47 {strides = array<i32>} : memref<2x160x320xf32, #tpu.memory_space<vmem>>, vector<1x160x320xf32>,
    return
  }
  func.func @transform_0(%arg0: i32, %arg1: i32) -> i32 {
    %c0_i32 = arith.constant 0 : i32
    %c0_i32_0 = arith.constant 0 : i32
    return %c0_i32 : i32
  }
  func.func @transform_1(%arg0: i32, %arg1: i32) -> i32 {
    %c0_i32 = arith.constant 0 : i32
    %c0_i32_0 = arith.constant 0 : i32
    return %c0_i32 : i32
  }
  func.func @transform_2(%arg0: i32, %arg1: i32) -> (i32, i32, i32, i32) {
    %c0_i32 = arith.constant 0 : i32
    %c0_i32_0 = arith.constant 0 : i32
    %c0_i32_1 = arith.constant 0 : i32
    %c0_i32_2 = arith.constant 0 : i32
    return %arg0, %c0_i32, %c0_i32_0, %c0_i32_1 : i32, i32, i32, i32
  }
  func.func @transform_3(%arg0: i32, %arg1: i32) -> (i32, i32) {
    %c0_i32 = arith.constant 0 : i32
    %c0_i32_0 = arith.constant 0 : i32
    %c0_i32_1 = arith.constant 0 : i32
    return %c0_i32, %c0_i32_0 : i32, i32
  }
  func.func @transform_4(%arg0: i32, %arg1: i32) -> (i32, i32) {
    %c0_i32 = arith.constant 0 : i32
    %c0_i32_0 = arith.constant 0 : i32
    return %arg1, %c0_i32 : i32, i32
  }
  func.func @transform_5(%arg0: i32, %arg1: i32) -> (i32, i32, i32) {
    %c0_i32 = arith.constant 0 : i32
    %c0_i32_0 = arith.constant 0 : i32
    return %arg0, %arg1, %c0_i32 : i32, i32, i32
  }
}

</mosaic_0001>

<bundles_post_ra>
// kernel: decoder_forward.1
= control target key start
LH: loop header
LB: loop body
LE: loop exit
PB: predicated region body
PF: predicated region fallthrough
CT: control target
= control target key end

     0   :  { %s3208_s0 = inlined_call_operand.vmem [shape: f32[4], index: 0, kind: input, shape index: {}]   ;;  %s3209_s1 = inlined_call_operand.<no memory space> [shape: f32[1], index: 1, kind: input, shape index: {}]   ;;  %s3210_s2 = inlined_call_operand.hbm [shape: f32[2,4,16,16], index: 2, kind: input, shape index: {}]   ;;  %s3211_s3 = inlined_call_operand.hbm [shape: f32[16,320], index: 3, kind: input, shape index: {}]   ;;  %s3212_s4 = inlined_call_operand.hbm [shape: f32[320,16], index: 4, kind: input, shape index: {}]   ;;  %s3213_s5 = inlined_call_operand.hbm [shape: f32[2,320,320], index: 5, kind: output, shape index: {}]  }
   0x1   :  { %3221 = sst [smem:[#allocation19_spill]] %s3208_s0 }
   0x2   :  { %10 = sst [smem:[#allocation2]] %s3209_s1 }
   0x3   :  { %11 = vsyncpa [#allocation6], 0 }
   0x4   :  { %12 = vsyncpa [#allocation4], 0 }
   0x5   :  { %13 = vsyncpa [#allocation9], 0 }
   0x6   :  { %14 = vsyncpa [#allocation5], 0 }
   0x7   :  { %16 = vsyncpa [#allocation5 + $0x1], 0  ;;  %s2470_s20 = smov 0   ;;  %s2472_s21 = smov 0  }
   0x8   :  { %s2474_s22 = smov 0   ;;  %s2476_s23 = smov 0  }
   0x9   :  { %s2478_s24 = smov 0   ;;  %s2480_s25 = smov 0  }
   0xa LB: > { %s2501_s1 = sadd.s32 4294967295, %s2419_s25   ;;  %s1784_s26 = sadd.s32 4294967294, %s2419_s25   ;;  %s2419_s25 = sphi %s2480_s25, %s22_s25   ;;  %s2415_s24 = sphi %s2478_s24, %s3249_s24   ;;  %s2411_s23 = sphi %s2476_s23, %s3248_s23   ;;  %s2407_s22 = sphi %s2474_s22, %s3247_s22   ;;  %s2403_s21 = sphi %s2472_s21, %s3246_s21   ;;  %s2399_s20 = sphi %s2470_s20, %s3245_s20  }
   0xb   : > { %p137_p0 = scmp.ne.s32.totalorder %s2407_s22, %s2403_s21  ;;  %p138_p1 = scmp.eq.s32.totalorder %s2419_s25, 0 }
   0xc   : > { %p143_p2 = scmp.ne.s32.totalorder %s2403_s21, %s2399_s20  ;;  %p3214_p3 = scmp.eq.s32.totalorder %s2501_s1, 0 }
   0xd   : > { %p169_p4 = scmp.eq.s32.totalorder %s2501_s1, 1  ;;  %p2511_p5 = por %p138_p1, %p137_p0 }
   0xe   : > { %p175_p6 = scmp.eq.s32.totalorder %s1784_s26, 1  ;;  %p2517_p7 = por %p3214_p3, %p143_p2 }
   0xf   : > { %p2521_p8 = por %p169_p4, %p137_p0  ;;  %p1785_p10 = scmp.ge.s32.totalorder %s2419_s25, 1 }
  0x10   : > { %s3223_s28 = scalar_select %p2517_p7, 1, 0 }
  0x11   : > { %s3224_s29 = scalar_select %p2521_p8, 1, 0 }
  0x12   : > { %p2525_p9 = por %p175_p6, %p143_p2  ;;  %p182_p11 = scmp.lt.s32.totalorder %s2419_s25, 3 }
  0x13   : > { %s2421_s7 = smov [#allocation7]   ;;  %p2167_p1 = scmp.lt.s32.totalorder %s2419_s25, 2 }
  0x14   : > { %s3225_s30 = scalar_select %p2525_p9, 1, 0 }
  0x15   : > { %p2531_p12 = pnand %p1785_p10, %p182_p11  ;;  %s212_s8 = sshll.u32 %s2421_s7, 4  ;;  %s2535_s8 = int_to_ptr.vmem [resolvable:$true] %s212_s8 }
  0x16   : > { %p2549_p4 = pnand %p2167_p1, %p2511_p5  ;;  %s3229_s0 = sld [smem:[#allocation19_spill]] }
  0x17   : > { %s3226_s6 = scalar_select %p2531_p12, 1, 0 }
  0x18   : > { %p2146_p13 = pneg %p2531_p12  ;;  %s2252_s16 = scalar_lea.hbm %s3210_s2, 2048 }
  0x19   : > { %s3228_s10 = scalar_select %p2549_p4, 1, 0 }
  0x1a   : > { %p2543_p2 = pnand %p2146_p13, %p3214_p3  ;;  %p2253_p6 = scmp.ne.s32.totalorder %s3210_s2, %s2252_s16 }
  0x1b   : > { %p2259_p13 = scmp.lt.u32.totalorder %s2252_s16, %s3210_s2 }
  0x1c   : > { %s195_s13 = sshll.u32 %s3229_s0, 4  ;;  %p2566_p10 = pneg %p2543_p2  ;;  %s2556_s13 = int_to_ptr.vmem [resolvable:$true] %s195_s13 }
  0x1e   : > { %p2255_p5 = pnand %p2566_p10, %p2253_p6 }
  0x20   : > { %p2256_p11 = pneg %p2255_p5 }
  0x22   : > { %p2261_p1 = pnand %p2259_p13, %p2256_p11 }
  0x24   : > { %2264 = shalt.err (!%p2261_p1)
}
  0x25   : > { %s2265_s7 = scalar_lea.vmem %s2535_s8, 2048  ;;  %p2273_p8 = scmp.lt.s32.totalorder %s2535_s8, %s2535_s8 }
  0x26   : > { %p2266_p0 = scmp.ne.s32.totalorder %s2535_s8, %s2265_s7  ;;  %p2274_p7 = scmp.lt.s32.totalorder %s2265_s7, %s2265_s7 }
  0x28   : > { %p2268_p3 = pnand %p2266_p0, %p2566_p10  ;;  %p2275_p6 = por %p2274_p7, %p2273_p8 }
  0x2a   : > { %p2269_p9 = pneg %p2268_p3 }
  0x2c   : > { %p2276_p5 = pnand %p2275_p6, %p2269_p9 }
  0x2e   : > { %2279 = shalt.err (!%p2276_p5)
}
  0x2f   : > { %s3217_s11 = smov 128   ;;  %s3220_s12 = smov 8  }
  0x30   : > { %2152 = dma.hbm_to_vmem [thread:$0]  (!%p2543_p2), %s3210_s2, 2048, %s2535_s8, [#allocation4], %s3217_s11, %s3217_s11, %s3220_s12  }
  0x31   : > { %s2280_s16 = scalar_lea.vmem %s2556_s13, 16  ;;  %p2288_p9 = scmp.lt.s32.totalorder %s2556_s13, %s2556_s13 }
  0x32   : > { %p2281_p3 = scmp.ne.s32.totalorder %s2556_s13, %s2280_s16  ;;  %p2289_p0 = scmp.lt.s32.totalorder %s2280_s16, %s2280_s16 }
  0x34   : > { %p2283_p7 = pnand %p2281_p3, %p2566_p10  ;;  %p2290_p11 = por %p2289_p0, %p2288_p9 }
  0x36   : > { %p2284_p8 = pneg %p2283_p7 }
  0x38   : > { %p2291_p13 = pnand %p2290_p11, %p2284_p8 }
  0x3a   : > { %2294 = shalt.err (!%p2291_p13)
}
  0x3b   : > { %s2424_s17 = smov [#allocation3]   ;;  %s2425_s18 = smov [#allocation8]  }
  0x3c   : > { %2149 = dma.vmem_to_smem (!%p2543_p2), %s2556_s13, 16, %s2424_s17, [#allocation6]  }
  0x3d   : > { %s225_s26 = sshll.u32 %s2425_s18, 4  ;;  %s2295_s7 = scalar_lea.hbm %s3211_s3, 768  ;;  %s226_s26 = int_to_ptr.vmem [resolvable:$true] %s225_s26 }
  0x3e   : > { %p2296_p1 = scmp.ne.s32.totalorder %s3211_s3, %s2295_s7  ;;  %p2302_p3 = scmp.lt.u32.totalorder %s2295_s7, %s3211_s3 }
  0x40   : > { %p2298_p6 = pnand %p2296_p1, %p2566_p10 }
  0x42   : > { %p2299_p5 = pneg %p2298_p6 }
  0x44   : > { %p2304_p7 = pnand %p2302_p3, %p2299_p5 }
  0x46   : > { %2307 = shalt.err (!%p2304_p7)
}
  0x47   : > { %s2308_s13 = scalar_lea.vmem %s226_s26, 768  ;;  %p2316_p11 = scmp.lt.s32.totalorder %s226_s26, %s226_s26 }
  0x48   : > { %p2309_p8 = scmp.ne.s32.totalorder %s226_s26, %s2308_s13  ;;  %p2317_p13 = scmp.lt.s32.totalorder %s2308_s13, %s2308_s13 }
  0x4a   : > { %p2311_p9 = pnand %p2309_p8, %p2566_p10  ;;  %p2318_p12 = por %p2317_p13, %p2316_p11 }
  0x4c   : > { %p2312_p0 = pneg %p2311_p9 }
  0x4e   : > { %p2319_p4 = pnand %p2318_p12, %p2312_p0 }
  0x50   : > { %2322 = shalt.err (!%p2319_p4)
}
  0x51   : > { %s2426_s17 = smov 384   ;;  %s2427_s11 = smov 24  }
  0x52   : > { %2155 = dma.hbm_to_vmem [thread:$0]  (!%p2543_p2), %s3211_s3, 768, %s226_s26, [#allocation9], %s2426_s17, %s2426_s17, %s2427_s11  }
  0x53   : > { %s239_s19 = sand.u32 1, %s2419_s25   ;;  %s130_s27 = sadd.s32 1, %s2407_s22 }
  0x54   : > { %s31_s7 = sadd.s32 1, %s2415_s24  ;;  %s241_s14 = sand.u32 1, %s2407_s22  }
  0x55   : > { %p32_p12 = scmp.ge.s32.totalorder %s31_s7, 2  ;;  %s2120_s15 = smul.u32 160, %s241_s14 }
  0x56   : > { %s1953_s16 = smul.u32 2560, %s2415_s24  ;;  %s2636_s11 = scalar_lea.sflag [#allocation4], %s239_s19 }
  0x57   : > { %s3251_s7 = smov (%p32_p12, %s31_s7), 0  ;;  %s243_s12 = scalar_lea.vmem [#allocation10], %s2120_s15 }
  0x58   : > { %s127_s13 = ssub.s32 %s2415_s24, %s3251_s7  ;;  %s250_s9 = sshll.u32 %s243_s12, 4  ;;  %s2631_s9 = int_to_ptr.vmem [resolvable:$true] %s250_s9 }
  0x59   : > { %p128_p4 = scmp.eq.s32.totalorder %s127_s13, 0  ;;  %s2629_s26 = scalar_lea.hbm %s3212_s4, %s1953_s16 }
  0x5a   : > { %s2323_s8 = scalar_lea.hbm %s2629_s26, 2560  ;;  %p3231_p10 = scmp.ne.s32.totalorder %s3228_s10, 0 }
  0x5b   : > { %s2634_s17 = scalar_select %p128_p4, %s2407_s22, %s130_s27  }
  0x5c   : > { %p2324_p2 = scmp.ne.s32.totalorder %s2629_s26, %s2323_s8  ;;  %p2325_p1 = pneg %p3231_p10 }
  0x5d   : > { %s2328_s14 = scalar_lea.hbm %s3212_s4, 5120  ;;  %p2329_p3 = scmp.lt.u32.totalorder %s2629_s26, %s3212_s4 }
  0x5e   : > { %p2326_p6 = pnand %p2325_p1, %p2324_p2  ;;  %p2330_p7 = scmp.lt.u32.totalorder %s2328_s14, %s2323_s8 }
  0x5f   : > { %p2332_p9 = scmp.lt.u32.totalorder %s2323_s8, %s2629_s26 }
  0x60   : > { %p2327_p5 = pneg %p2326_p6  ;;  %p2331_p8 = por %p2330_p7, %p2329_p3 }
  0x62   : > { %p2333_p0 = por %p2332_p9, %p2331_p8 }
  0x64   : > { %p2334_p11 = pnand %p2333_p0, %p2327_p5 }
  0x66   : > { %2337 = shalt.err (!%p2334_p11)
}
  0x67   : > { %s2338_s19 = scalar_lea.vmem %s2631_s9, 2560  ;;  %s2428_s27 = smov [#allocation10]  }
  0x68   : > { %p2339_p13 = scmp.ne.s32.totalorder %s2631_s9, %s2338_s19  ;;  %s2343_s13 = sshll.u32 %s2428_s27, 4  ;;  %s2344_s13 = int_to_ptr.vmem [resolvable:$false] %s2343_s13 }
  0x69   : > { %s2345_s18 = scalar_lea.vmem %s2344_s13, 5120  ;;  %p2346_p2 = scmp.lt.s32.totalorder %s2631_s9, %s2344_s13 }
  0x6a   : > { %p2341_p12 = pnand %p2339_p13, %p2325_p1  ;;  %p2347_p6 = scmp.lt.s32.totalorder %s2345_s18, %s2338_s19 }
  0x6c   : > { %p2342_p4 = pneg %p2341_p12  ;;  %p2348_p3 = por %p2347_p6, %p2346_p2 }
  0x6e   : > { %p2349_p7 = pnand %p2348_p3, %p2342_p4 }
  0x70   : > { %2352 = shalt.err (!%p2349_p7)
}
  0x71   : > { %s3232_s8 = smov 8   ;;  %s3233_s0 = smov 128  }
  0x72   : > { %2159 = dma.hbm_to_vmem [thread:$0]  (!%p3231_p10), %s2629_s26, 2560, %s2631_s9, %s2636_s11, %s3233_s0, %s3233_s0, %s3232_s8  }
  0x73   : > { %p3234_p1 = scmp.ne.s32.totalorder %s3226_s6, 0 }
  0x74   : > { %p3235_p5 = scmp.eq.s32.totalorder (!%p3234_p1), %s2501_s1, 0 }
  0x75   : > { %262 = sbr.rel (%p3234_p1) target bundleno = 972 (0x3cc), region = 40 }
  0x7c   : > { %2378 = dma.done.wait (%p3235_p5), [#allocation6], 16   ;;  %p3236_p8 = pmov %p3235_p5 }
  0x7d   : > { %p3237_p9 = pmov %p3235_p5 }
  0x7e   : > { %2380 = vsyncadd (%p3236_p8), [#allocation6], 4294967280 }
  0x7f   : > { %2382 = dma.done.wait (%p3237_p9), [#allocation4], 2048   ;;  %p3238_p0 = pmov %p3235_p5 }
  0x81   : > { %2384 = vsyncadd (%p3238_p0), [#allocation4], 4294965248  ;;  %p3239_p11 = pmov %p3238_p0 }
  0x82   : > { %p3240_p10 = pmov %p3238_p0 }
  0x83   : > { %2386 = dma.done.wait (%p3239_p11), [#allocation9], 768  }
  0x84   : > { %2388 = vsyncadd (%p3240_p10), [#allocation9], 4294966528  ;;  %s276_s6 = sand.u32 1, %s2501_s1   ;;  %s2683_s10 = sand.u32 1, %s2403_s21  }
  0x85   : > { %s2121_s9 = smul.u32 160, %s2683_s10  ;;  %s277_s26 = scalar_lea.sflag [#allocation4], %s276_s6 }
  0x86   : > { %p3241_p13 = scmp.ne.s32.totalorder %s3223_s28, 0 }
  0x87   : > { %s2686_s11 = scalar_lea.vmem [#allocation10], %s2121_s9 }
  0x88   : > { %2390 = dma.done.wait (%p3241_p13), %s277_s26, 2560  }
  0x89   : > { %2392 = vsyncadd (%p3241_p13), %s277_s26, 4294964736 }
  0x8a   : > { %285 = sfence }
  0x8b   : > { %v395_v0 = vld [vmem:[#allocation8 + $0x8] sm:$0xff]  ;;  %v398_v1 = vld [vmem:[#allocation8 + $0x20] sm:$0xff]  ;;  %s328_s12 = sld [smem:[#allocation3]]  ;;  %v397_v4 = vld [vmem:[#allocation8 + $0x18] sm:$0xff]  ;;  %v2429_v5 = vmov 0.0   ;;  %s1795_s1 = sld [smem:[#allocation3 + $0x1]] }
  0x8c   : > { %v394_v2 = vld [vmem:[#allocation8] sm:$0xff]  ;;  %v2692_v3 = vpack.c.bf16 %v398_v1, %v395_v0  ;;  %491 = vmatprep.mubr.f32.mxu1 %v2429_v5  ;;  %s1796_s14 = sld [smem:[#allocation3 + $0x2]]  ;;  %s1797_s15 = sld [smem:[#allocation3 + $0x3]]  ;;  %v314_v8 = vld [vmem:[#allocation7 + $0x10] sm:$0xff]  ;;  %v313_v9 = vld [vmem:[#allocation7 + $0x8] sm:$0xff]  ;;  %vm420_vm0 = vcmask 130048  }
  0x8d   : > { %v2695_v6 = vpack.c.bf16 %v397_v4, %v394_v2  ;;  %v312_v7 = vld [vmem:[#allocation7] sm:$0xff]  ;;  %s364_s28 = sld [smem:[#allocation2]]  ;;  %v315_v10 = vld [vmem:[#allocation7 + $0x18] sm:$0xff]  ;;  %v396_v11 = vld [vmem:[#allocation8 + $0x10] sm:$0xff]  ;;  %s2122_s16 = smul.u32 960, %s2683_s10  ;;  %vm991_vm1 = vcmask 523264  }
  0x8e   : > { %2089 = vmatprep.subr.bf16.mxu1 %v2692_v3  ;;  %v399_v12 = vld [vmem:[#allocation8 + $0x28] sm:$0xff]  ;;  %v316_v13 = vld [vmem:[#allocation7 + $0x20] sm:$0xff]  ;;  %v318_v17 = vld [vmem:[#allocation7 + $0x30] sm:$0xff]  ;;  %s1620_s27 = scalar_lea.sflag [#allocation5], %s2683_s10 }
  0x8f   : > { %2091 = vmatpush1.bf16.msra.mxu1 %v2695_v6  ;;  %v317_v15 = vld [vmem:[#allocation7 + $0x28] sm:$0xff]  ;;  %v2701_v16 = vpack.c.bf16 %v399_v12, %v396_v11  ;;  %v319_v23 = vld [vmem:[#allocation7 + $0x38] sm:$0xff]  ;;  %v2726_v47 = vld [vmem:[%s2686_s11] sm:$0xff]  ;;  %s2906_s19 = scalar_lea.vmem [#allocation11], %s2122_s16 }
  0x90   : > { %2017 = vmatprep.mubr.msk.f32.mxu0 %vm420_vm0, %v2726_v47  ;;  %v320_v48 = vld [vmem:[#allocation7 + $0x40] sm:$0xff]  ;;  %v322_v49 = vld [vmem:[#allocation7 + $0x50] sm:$0xff]  ;;  %v321_v55 = vld [vmem:[#allocation7 + $0x48] sm:$0xff] }
  0x91   : > { %v2699_v14 = vstv %s328_s12  ;;  %v335_v19 = vstv %s1795_s1  ;;  %2093 = vmatprep.subr.bf16.mxu1 %v2701_v16  ;;  %v324_v52 = vld [vmem:[#allocation7 + $0x60] sm:$0xff]  ;;  %v323_v56 = vld [vmem:[#allocation7 + $0x58] sm:$0xff]  ;;  %v326_v61 = vld [vmem:[#allocation7 + $0x70] sm:$0xff] }
  0x92   : > { %v330_v18 = vmul.f32 %v2699_v14, %v312_v7  ;;  %v331_v20 = vmul.f32 %v2699_v14, %v313_v9  ;;  %v336_v21 = vmul.f32 %v335_v19, %v314_v8  ;;  %v2705_v22 = vstv %s1796_s14  ;;  %v325_v2 = vld [vmem:[#allocation7 + $0x68] sm:$0xff] }
  0x93   : > { %v337_v24 = vmul.f32 %v335_v19, %v315_v10  ;;  %v346_v25 = vmul.f32 %v2705_v22, %v316_v13  ;;  %v2709_v26 = vstv %s1797_s15  ;;  %v347_v27 = vmul.f32 %v2705_v22, %v317_v15  ;;  %v327_v13 = vld [vmem:[#allocation7 + $0x78] sm:$0xff] }
  0x94   : > { %v340_v28 = vadd.f32 %v336_v21, %v330_v18  ;;  %v356_v29 = vmul.f32 %v2709_v26, %v318_v17  ;;  %v357_v31 = vmul.f32 %v2709_v26, %v319_v23  ;;  %v2714_v33 = vstv %s364_s28  ;;  %v2742_v17 = vld [vmem:[%s2686_s11 + $0x10] sm:$0xff]  ;;  %v2758_v21 = vld [vmem:[%s2686_s11 + $0x20] sm:$0xff] }
  0x95   : > { %v341_v30 = vadd.f32 %v337_v24, %v331_v20  ;;  %v332_v53 = vmul.f32 %v2699_v14, %v320_v48  ;;  %v338_v54 = vmul.f32 %v335_v19, %v322_v49  ;;  %v348_v58 = vmul.f32 %v2705_v22, %v324_v52  ;;  %v2753_v20 = vld [vmem:[%s2686_s11 + $0x18] sm:$0xff]  ;;  %v2773_v24 = vld [vmem:[%s2686_s11 + $0x30] sm:$0xff] }
  0x96   : > { %v350_v32 = vadd.f32 %v346_v25, %v340_v28  ;;  %v333_v0 = vmul.f32 %v2699_v14, %v321_v55  ;;  %v339_v1 = vmul.f32 %v335_v19, %v323_v56  ;;  %v358_v7 = vmul.f32 %v2709_v26, %v326_v61  ;;  %v2738_v14 = vld [vmem:[%s2686_s11 + $0x8] sm:$0xff] }
  0x97   : > { %v351_v34 = vadd.f32 %v347_v27, %v341_v30  ;;  %v342_v62 = vadd.f32 %v338_v54, %v332_v53  ;;  %v349_v12 = vmul.f32 %v2705_v22, %v325_v2  ;;  %v359_v19 = vmul.f32 %v2709_v26, %v327_v13  ;;  %v2783_v26 = vld [vmem:[%s2686_s11 + $0x38] sm:$0xff]  ;;  %v2787_v27 = vld [vmem:[%s2686_s11 + $0x40] sm:$0xff]  ;;  %v2800_v30 = vld [vmem:[%s2686_s11 + $0x50] sm:$0xff] }
  0x98   : > { %v360_v35 = vadd.f32 %v356_v29, %v350_v32  ;;  %v343_v11 = vadd.f32 %v339_v1, %v333_v0  ;;  %v2796_v29 = vld [vmem:[%s2686_s11 + $0x48] sm:$0xff]  ;;  %v2813_v32 = vld [vmem:[%s2686_s11 + $0x60] sm:$0xff] }
  0x99   : > { %v361_v36 = vadd.f32 %v357_v31, %v351_v34  ;;  %v352_v9 = vadd.f32 %v348_v58, %v342_v62  ;;  %v2809_v31 = vld [vmem:[%s2686_s11 + $0x58] sm:$0xff]  ;;  %v2822_v34 = vld [vmem:[%s2686_s11 + $0x68] sm:$0xff] }
  0x9a   : > { %v366_v37 = vadd.f32 %v2714_v33, %v360_v35  ;;  %v353_v18 = vadd.f32 %v349_v12, %v343_v11  ;;  %v2826_v35 = vld [vmem:[%s2686_s11 + $0x70] sm:$0xff] }
  0x9b   : > { %v367_v38 = vadd.f32 %v2714_v33, %v361_v36  ;;  %v362_v15 = vadd.f32 %v358_v7, %v352_v9 }
  0x9c   : > { %v1798_v39 = vmul.f32 -1.442695, %v366_v37  ;;  %v363_v22 = vadd.f32 %v359_v19, %v353_v18 }
  0x9d   : > { %v1799_v40 = vmul.f32 -1.442695, %v367_v38  ;;  %v2835_v38 = vld [vmem:[%s2686_s11 + $0x78] sm:$0xff] }
  0x9e   : > { %2236 = vpow2.f32 %v1798_v39  ;;  %v369_v25 = vadd.f32 %v2714_v33, %v363_v22  ;;  %v2839_v39 = vld [vmem:[%s2686_s11 + $0x80] sm:$0xff] }
  0x9f   : > { %2238 = vpow2.f32 %v1799_v40 }
  0xa0   : > { %v1801_v28 = vmul.f32 -1.442695, %v369_v25 }
  0xa8   : > { %v2237_v41 = vpop.eup %2236 }
  0xa9   : > { %v382_v42 = vadd.f32 1.0, %v2237_v41  ;;  %v2239_v43 = vpop.eup %2238  ;;  %v2848_v41 = vld [vmem:[%s2686_s11 + $0x88] sm:$0xff] }
  0xaa   : > { %v383_v44 = vadd.f32 1.0, %v2239_v43  ;;  %v2861_v43 = vld [vmem:[%s2686_s11 + $0x98] sm:$0xff] }
  0xab   : > { %2240 = vrcp.f32 %v382_v42  ;;  %v2852_v42 = vld [vmem:[%s2686_s11 + $0x90] sm:$0xff] }
  0xac   : > { %2242 = vrcp.f32 %v383_v44 }
  0xb5   : > { %v2241_v45 = vpop.eup %2240 }
  0xb6   : > { %1802 = vmatmul.mubr.msk.f32.vlgmr.msra.gmra.mrb[0].mxu1 %vm420_vm0, %v2241_v45  ;;  %v2243_v46 = vpop.eup %2242 }
  0xb7   : > { %497 = vmatprep.mubr.f32.mxu1 %v2429_v5  ;;  %2095 = vmatpush3.bf16.msra.mxu1 %v2701_v16 }
  0xba   : > { %1803 = vmatmul.mubr.msk.f32.gmra.mrb[2].mxu1 %vm420_vm0, %v2243_v46 }
  0xbb   : > { %2010 = vmatprep.mubr.msk.f32.mxu1 %vm420_vm0, %v2241_v45 }
  0xbe   : > { %2011 = vmatmul.mubr.msk.f32.vlgmr.msra.gmra.mrb[4].mxu1 %vm420_vm0, %v2243_v46 }
  0xbf   : > { %703 = vmatprep.mubr.f32.mxu1 %v2429_v5 }
 0x189   : > { %v493_v50 = vpop.f32.mrb[0].mxu1 }
 0x18a   : > { %v495_v51 = vpop.f32.mrb[1].mxu1 }
 0x18d   : > { %v499_v57 = vpop.f32.mrb[2].mxu1 }
 0x18e   : > { %v2098_v59 = vpack.c.bf16 %v499_v57, %v493_v50  ;;  %v501_v60 = vpop.f32.mrb[3].mxu1 }
 0x18f   : > { %v2096_v63 = vpack.c.bf16 %v501_v60, %v495_v51 }
 0x191   : > { %v2012_v4 = vpop.f32.mrb[4].mxu1  ;;  %2097 = vmatprep.subr.bf16.mxu1 %v2096_v63 }
 0x192   : > { %v570_v8 = vpop.f32.mrb[5].mxu1  ;;  %2099 = vmatpush1.bf16.msra.mxu1 %v2098_v59 }
 0x193   : > { %v2100_v10 = vpack.c.bf16 %v2012_v4, %v570_v8 }
 0x195   : > { %2101 = vmatprep.subr.bf16.mxu0 %v2100_v10  ;;  %1806 = vmatmul.mubr.msk.f32.vlgmr.msra.gmra.mrb[6].mxu1 %vm420_vm0, %v2726_v47 }
 0x196   : > { %2103 = vmatpush3.bf16.msra.mxu0 %v2100_v10  ;;  %709 = vmatprep.mubr.f32.mxu1 %v2429_v5 }
 0x197   : > { %2105 = vmatprep.subr.bf16.mxu0 %v2692_v3  ;;  %v368_v3 = vadd.f32 %v2714_v33, %v362_v15 }
 0x199   : > { %2018 = vmatmul.mubr.msk.f32.vlgmr.msra.gmra.mrb[0].mxu0 %vm420_vm0, %v2738_v14  ;;  %1807 = vmatmul.mubr.msk.f32.gmra.mrb[8].mxu1 %vm420_vm0, %v2738_v14  ;;  %v1800_v23 = vmul.f32 -1.442695, %v368_v3 }
 0x19a   : > { %2020 = vmatprep.mubr.msk.f32.mxu0 %vm420_vm0, %v2742_v17  ;;  %2107 = vmatpush1.bf16.msra.mxu0 %v2695_v6  ;;  %v2769_v6 = vld [vmem:[%s2686_s11 + $0x28] sm:$0xff] }
 0x19b   : > { %2109 = vmatprep.subr.bf16.mxu0 %v2701_v16  ;;  %715 = vmatprep.mubr.f32.mxu1 %v2429_v5  ;;  %2244 = vpow2.f32 %v1800_v23 }
 0x19c   : > { %2246 = vpow2.f32 %v1801_v28 }
 0x19d   : > { %2021 = vmatmul.mubr.msk.f32.gmra.mrb[2].mxu0 %vm420_vm0, %v2753_v20  ;;  %1808 = vmatmul.mubr.msk.f32.gmra.mrb[10].mxu1 %vm420_vm0, %v2742_v17 }
 0x19e   : > { %2023 = vmatprep.mubr.msk.f32.mxu0 %vm420_vm0, %v2758_v21  ;;  %721 = vmatprep.mubr.f32.mxu1 %v2429_v5 }
 0x1a1   : > { %2024 = vmatmul.mubr.msk.f32.gmra.mrb[4].mxu0 %vm420_vm0, %v2769_v6  ;;  %1809 = vmatmul.mubr.msk.f32.gmra.mrb[12].mxu1 %vm420_vm0, %v2753_v20 }
 0x1a2   : > { %2026 = vmatprep.mubr.msk.f32.mxu0 %vm420_vm0, %v2773_v24  ;;  %727 = vmatprep.mubr.f32.mxu1 %v2429_v5 }
 0x1a5   : > { %2027 = vmatmul.mubr.msk.f32.gmra.mrb[6].mxu0 %vm420_vm0, %v2783_v26  ;;  %1810 = vmatmul.mubr.msk.f32.gmra.mrb[14].mxu1 %vm420_vm0, %v2758_v21  ;;  %v2245_v33 = vpop.eup %2244 }
 0x1a6   : > { %2029 = vmatprep.mubr.msk.f32.mxu0 %vm420_vm0, %v2787_v27  ;;  %733 = vmatprep.mubr.f32.mxu1 %v2429_v5  ;;  %v384_v36 = vadd.f32 1.0, %v2245_v33  ;;  %v2247_v37 = vpop.eup %2246 }
 0x1a7   : > { %v385_v40 = vadd.f32 1.0, %v2247_v37 }
 0x1a8   : > { %2248 = vrcp.f32 %v384_v36 }
 0x1a9   : > { %2030 = vmatmul.mubr.msk.f32.gmra.mrb[8].mxu0 %vm420_vm0, %v2796_v29  ;;  %1811 = vmatmul.mubr.msk.f32.gmra.mrb[16].mxu1 %vm420_vm0, %v2769_v6  ;;  %2250 = vrcp.f32 %v385_v40 }
 0x1aa   : > { %2032 = vmatprep.mubr.msk.f32.mxu0 %vm420_vm0, %v2800_v30  ;;  %739 = vmatprep.mubr.f32.mxu1 %v2429_v5 }
 0x1ad   : > { %2033 = vmatmul.mubr.msk.f32.gmra.mrb[10].mxu0 %vm420_vm0, %v2809_v31  ;;  %1812 = vmatmul.mubr.msk.f32.gmra.mrb[18].mxu1 %vm420_vm0, %v2773_v24 }
 0x1ae   : > { %2035 = vmatprep.mubr.msk.f32.mxu0 %vm420_vm0, %v2813_v32  ;;  %745 = vmatprep.mubr.f32.mxu1 %v2429_v5 }
 0x1b1   : > { %2036 = vmatmul.mubr.msk.f32.gmra.mrb[12].mxu0 %vm420_vm0, %v2822_v34  ;;  %1813 = vmatmul.mubr.msk.f32.gmra.mrb[20].mxu1 %vm420_vm0, %v2783_v26 }
 0x1b2   : > { %2038 = vmatprep.mubr.msk.f32.mxu0 %vm420_vm0, %v2826_v35  ;;  %751 = vmatprep.mubr.f32.mxu1 %v2429_v5  ;;  %v2249_v44 = vpop.eup %2248 }
 0x1b3   : > { %v2251_v45 = vpop.eup %2250 }
 0x1b5   : > { %2039 = vmatmul.mubr.msk.f32.gmra.mrb[14].mxu0 %vm420_vm0, %v2835_v38  ;;  %1814 = vmatmul.mubr.msk.f32.gmra.mrb[22].mxu1 %vm420_vm0, %v2787_v27 }
 0x1b6   : > { %2041 = vmatprep.mubr.msk.f32.mxu0 %vm420_vm0, %v2839_v39  ;;  %757 = vmatprep.mubr.f32.mxu1 %v2429_v5 }
 0x1b9   : > { %2042 = vmatmul.mubr.msk.f32.gmra.mrb[16].mxu0 %vm420_vm0, %v2848_v41  ;;  %1815 = vmatmul.mubr.msk.f32.gmra.mrb[24].mxu1 %vm420_vm0, %v2796_v29 }
 0x1ba   : > { %2044 = vmatprep.mubr.msk.f32.mxu0 %vm420_vm0, %v2852_v42  ;;  %763 = vmatprep.mubr.f32.mxu1 %v2429_v5 }
 0x1bd   : > { %2045 = vmatmul.mubr.msk.f32.gmra.mrb[18].mxu0 %vm420_vm0, %v2861_v43  ;;  %1816 = vmatmul.mubr.msk.f32.gmra.mrb[26].mxu1 %vm420_vm0, %v2800_v30 }
 0x1be   : > { %1120 = vmatprep.mubr.f32.mxu0 %v2429_v5  ;;  %769 = vmatprep.mubr.f32.mxu1 %v2429_v5 }
 0x1c1   : > { %1846 = vmatmul.mubr.msk.f32.vlgmr.msra.gmra.mrb[20].mxu0 %vm420_vm0, %v2249_v44  ;;  %1817 = vmatmul.mubr.msk.f32.gmra.mrb[28].mxu1 %vm420_vm0, %v2809_v31 }
 0x1c2   : > { %1126 = vmatprep.mubr.f32.mxu0 %v2429_v5  ;;  %2111 = vmatpush3.bf16.msra.mxu0 %v2701_v16 }
 0x1c3   : > { %775 = vmatprep.mubr.f32.mxu1 %v2429_v5 }
 0x1c5   : > { %1847 = vmatmul.mubr.msk.f32.gmra.mrb[22].mxu0 %vm420_vm0, %v2251_v45  ;;  %1818 = vmatmul.mubr.msk.f32.gmra.mrb[30].mxu1 %vm420_vm0, %v2813_v32 }
 0x1c6   : > { %2051 = vmatprep.mubr.msk.f32.mxu0 %vm420_vm0, %v2249_v44  ;;  %781 = vmatprep.mubr.f32.mxu1 %v2429_v5 }
 0x1c9   : > { %2052 = vmatmul.mubr.msk.f32.vlgmr.msra.gmra.mrb[24].mxu0 %vm420_vm0, %v2251_v45  ;;  %1819 = vmatmul.mubr.msk.f32.gmra.mrb[32].mxu1 %vm420_vm0, %v2822_v34 }
 0x1ca   : > { %1272 = vmatprep.mubr.f32.mxu0 %v2429_v5  ;;  %787 = vmatprep.mubr.f32.mxu1 %v2429_v5 }
 0x1cd   : > { %1820 = vmatmul.mubr.msk.f32.gmra.mrb[34].mxu1 %vm420_vm0, %v2826_v35 }
 0x1ce   : > { %793 = vmatprep.mubr.f32.mxu1 %v2429_v5 }
 0x1d1   : > { %1821 = vmatmul.mubr.msk.f32.gmra.mrb[36].mxu1 %vm420_vm0, %v2835_v38 }
 0x1d2   : > { %799 = vmatprep.mubr.f32.mxu1 %v2429_v5 }
 0x1d5   : > { %1822 = vmatmul.mubr.msk.f32.gmra.mrb[38].mxu1 %vm420_vm0, %v2839_v39 }
 0x1d6   : > { %805 = vmatprep.mubr.f32.mxu1 %v2429_v5 }
 0x1d9   : > { %1823 = vmatmul.mubr.msk.f32.gmra.mrb[40].mxu1 %vm420_vm0, %v2848_v41 }
 0x1da   : > { %811 = vmatprep.mubr.f32.mxu1 %v2429_v5 }
 0x1dd   : > { %1824 = vmatmul.mubr.msk.f32.gmra.mrb[42].mxu1 %vm420_vm0, %v2852_v42 }
 0x1de   : > { %817 = vmatprep.mubr.f32.mxu1 %v2429_v5 }
 0x1e1   : > { %1825 = vmatmul.mubr.msk.f32.gmra.mrb[44].mxu1 %vm420_vm0, %v2861_v43 }
 0x1e2   : > { %2058 = vmatprep.mubr.msk.f32.mxu1 %vm420_vm0, %v2726_v47 }
 0x268   : > { %v705_v46 = vpop.f32.mrb[6].mxu1 }
 0x269   : > { %989 = vst [vmem:[%s2906_s19] sm:$0xff] %v705_v46  ;;  %v707_v49 = vpop.f32.mrb[7].mxu1 }
 0x26a   : > { %990 = vst [vmem:[%s2906_s19 + $0x8] sm:$0xff] %v707_v49 }
 0x26c   : > { %v2019_v16 = vpop.f32.mrb[0].mxu0  ;;  %v711_v50 = vpop.f32.mrb[8].mxu1 }
 0x26d   : > { %995 = vst.msk [vmem:[%s2906_s19 + $0x28] sm:$0xff] %vm991_vm1, %v2019_v16  ;;  %v890_v48 = vpop.f32.mrb[1].mxu0  ;;  %993 = vst [vmem:[%s2906_s19 + $0x18] sm:$0xff] %v711_v50  ;;  %v713_v51 = vpop.f32.mrb[9].mxu1 }
 0x26e   : > { %992 = vst.msk [vmem:[%s2906_s19 + $0x10] sm:$0xff] %vm991_vm1, %v890_v48  ;;  %994 = vst [vmem:[%s2906_s19 + $0x20] sm:$0xff] %v713_v51 }
 0x270   : > { %v2022_v52 = vpop.f32.mrb[2].mxu0  ;;  %v717_v53 = vpop.f32.mrb[10].mxu1 }
 0x271   : > { %1001 = vst.msk [vmem:[%s2906_s19 + $0x58] sm:$0xff] %vm991_vm1, %v2022_v52  ;;  %v900_v54 = vpop.f32.mrb[3].mxu0  ;;  %996 = vst [vmem:[%s2906_s19 + $0x30] sm:$0xff] %v717_v53  ;;  %v719_v55 = vpop.f32.mrb[11].mxu1 }
 0x272   : > { %998 = vst.msk [vmem:[%s2906_s19 + $0x40] sm:$0xff] %vm991_vm1, %v900_v54  ;;  %997 = vst [vmem:[%s2906_s19 + $0x38] sm:$0xff] %v719_v55 }
 0x274   : > { %v2025_v56 = vpop.f32.mrb[4].mxu0  ;;  %v723_v57 = vpop.f32.mrb[12].mxu1 }
 0x275   : > { %1007 = vst.msk [vmem:[%s2906_s19 + $0x88] sm:$0xff] %vm991_vm1, %v2025_v56  ;;  %v910_v58 = vpop.f32.mrb[5].mxu0  ;;  %999 = vst [vmem:[%s2906_s19 + $0x48] sm:$0xff] %v723_v57  ;;  %v725_v59 = vpop.f32.mrb[13].mxu1 }
 0x276   : > { %1004 = vst.msk [vmem:[%s2906_s19 + $0x70] sm:$0xff] %vm991_vm1, %v910_v58  ;;  %1000 = vst [vmem:[%s2906_s19 + $0x50] sm:$0xff] %v725_v59 }
 0x278   : > { %v2028_v60 = vpop.f32.mrb[6].mxu0  ;;  %v729_v61 = vpop.f32.mrb[14].mxu1 }
 0x279   : > { %1013 = vst.msk [vmem:[%s2906_s19 + $0xb8] sm:$0xff] %vm991_vm1, %v2028_v60  ;;  %v920_v62 = vpop.f32.mrb[7].mxu0  ;;  %1002 = vst [vmem:[%s2906_s19 + $0x60] sm:$0xff] %v729_v61  ;;  %v731_v63 = vpop.f32.mrb[15].mxu1 }
 0x27a   : > { %1010 = vst.msk [vmem:[%s2906_s19 + $0xa0] sm:$0xff] %vm991_vm1, %v920_v62  ;;  %1003 = vst [vmem:[%s2906_s19 + $0x68] sm:$0xff] %v731_v63 }
 0x27c   : > { %v2031_v0 = vpop.f32.mrb[8].mxu0  ;;  %v735_v1 = vpop.f32.mrb[16].mxu1 }
 0x27d   : > { %1019 = vst.msk [vmem:[%s2906_s19 + $0xe8] sm:$0xff] %vm991_vm1, %v2031_v0  ;;  %v930_v2 = vpop.f32.mrb[9].mxu0  ;;  %1005 = vst [vmem:[%s2906_s19 + $0x78] sm:$0xff] %v735_v1  ;;  %v737_v4 = vpop.f32.mrb[17].mxu1 }
 0x27e   : > { %1016 = vst.msk [vmem:[%s2906_s19 + $0xd0] sm:$0xff] %vm991_vm1, %v930_v2  ;;  %1006 = vst [vmem:[%s2906_s19 + $0x80] sm:$0xff] %v737_v4 }
 0x280   : > { %v2034_v7 = vpop.f32.mrb[10].mxu0  ;;  %v741_v8 = vpop.f32.mrb[18].mxu1 }
 0x281   : > { %1025 = vst.msk [vmem:[%s2906_s19 + $0x118] sm:$0xff] %vm991_vm1, %v2034_v7  ;;  %v940_v9 = vpop.f32.mrb[11].mxu0  ;;  %1008 = vst [vmem:[%s2906_s19 + $0x90] sm:$0xff] %v741_v8  ;;  %v743_v10 = vpop.f32.mrb[19].mxu1 }
 0x282   : > { %1022 = vst.msk [vmem:[%s2906_s19 + $0x100] sm:$0xff] %vm991_vm1, %v940_v9  ;;  %1009 = vst [vmem:[%s2906_s19 + $0x98] sm:$0xff] %v743_v10 }
 0x284   : > { %v2037_v11 = vpop.f32.mrb[12].mxu0  ;;  %v747_v12 = vpop.f32.mrb[20].mxu1 }
 0x285   : > { %1031 = vst.msk [vmem:[%s2906_s19 + $0x148] sm:$0xff] %vm991_vm1, %v2037_v11  ;;  %v950_v13 = vpop.f32.mrb[13].mxu0  ;;  %1011 = vst [vmem:[%s2906_s19 + $0xa8] sm:$0xff] %v747_v12  ;;  %v749_v15 = vpop.f32.mrb[21].mxu1 }
 0x286   : > { %1028 = vst.msk [vmem:[%s2906_s19 + $0x130] sm:$0xff] %vm991_vm1, %v950_v13  ;;  %1012 = vst [vmem:[%s2906_s19 + $0xb0] sm:$0xff] %v749_v15 }
 0x288   : > { %v2040_v18 = vpop.f32.mrb[14].mxu0  ;;  %v753_v19 = vpop.f32.mrb[22].mxu1 }
 0x289   : > { %1037 = vst.msk [vmem:[%s2906_s19 + $0x178] sm:$0xff] %vm991_vm1, %v2040_v18  ;;  %v960_v3 = vpop.f32.mrb[15].mxu0  ;;  %1014 = vst [vmem:[%s2906_s19 + $0xc0] sm:$0xff] %v753_v19  ;;  %v755_v22 = vpop.f32.mrb[23].mxu1 }
 0x28a   : > { %1034 = vst.msk [vmem:[%s2906_s19 + $0x160] sm:$0xff] %vm991_vm1, %v960_v3  ;;  %1015 = vst [vmem:[%s2906_s19 + $0xc8] sm:$0xff] %v755_v22 }
 0x28c   : > { %v2043_v23 = vpop.f32.mrb[16].mxu0  ;;  %v759_v25 = vpop.f32.mrb[24].mxu1 }
 0x28d   : > { %1043 = vst.msk [vmem:[%s2906_s19 + $0x1a8] sm:$0xff] %vm991_vm1, %v2043_v23  ;;  %v970_v28 = vpop.f32.mrb[17].mxu0  ;;  %1017 = vst [vmem:[%s2906_s19 + $0xd8] sm:$0xff] %v759_v25  ;;  %v761_v33 = vpop.f32.mrb[25].mxu1 }
 0x28e   : > { %1040 = vst.msk [vmem:[%s2906_s19 + $0x190] sm:$0xff] %vm991_vm1, %v970_v28  ;;  %1018 = vst [vmem:[%s2906_s19 + $0xe0] sm:$0xff] %v761_v33 }
 0x290   : > { %v2046_v36 = vpop.f32.mrb[18].mxu0  ;;  %v765_v37 = vpop.f32.mrb[26].mxu1 }
 0x291   : > { %1049 = vst.msk [vmem:[%s2906_s19 + $0x1d8] sm:$0xff] %vm991_vm1, %v2046_v36  ;;  %v980_v40 = vpop.f32.mrb[19].mxu0  ;;  %1020 = vst [vmem:[%s2906_s19 + $0xf0] sm:$0xff] %v765_v37 }
 0x292   : > { %1046 = vst.msk [vmem:[%s2906_s19 + $0x1c0] sm:$0xff] %vm991_vm1, %v980_v40 }
 0x294   : > { %v1122_v44 = vpop.f32.mrb[20].mxu0 }
 0x295   : > { %v1124_v45 = vpop.f32.mrb[21].mxu0 }
 0x298   : > { %v1128_v16 = vpop.f32.mrb[22].mxu0 }
 0x299   : > { %v2114_v46 = vpack.c.bf16 %v1128_v16, %v1122_v44  ;;  %v1130_v48 = vpop.f32.mrb[23].mxu0 }
 0x29a   : > { %v2112_v49 = vpack.c.bf16 %v1130_v48, %v1124_v45 }
 0x29c   : > { %v2053_v50 = vpop.f32.mrb[24].mxu0  ;;  %2113 = vmatprep.subr.bf16.mxu0 %v2112_v49 }
 0x29d   : > { %v1199_v51 = vpop.f32.mrb[25].mxu0  ;;  %2115 = vmatpush1.bf16.msra.mxu0 %v2114_v46 }
 0x29e   : > { %v2116_v52 = vpack.c.bf16 %v2053_v50, %v1199_v51 }
 0x2a0   : > { %2117 = vmatprep.subr.bf16.mxu1 %v2116_v52  ;;  %1850 = vmatmul.mubr.msk.f32.vlgmr.msra.gmra.mrb[26].mxu0 %vm420_vm0, %v2726_v47  ;;  %v767_v47 = vpop.f32.mrb[27].mxu1 }
 0x2a1   : > { %2119 = vmatpush3.bf16.msra.mxu1 %v2116_v52  ;;  %1278 = vmatprep.mubr.f32.mxu0 %v2429_v5  ;;  %1021 = vst [vmem:[%s2906_s19 + $0xf8] sm:$0xff] %v767_v47 }
 0x2a4   : > { %1851 = vmatmul.mubr.msk.f32.gmra.mrb[28].mxu0 %vm420_vm0, %v2738_v14  ;;  %2059 = vmatmul.mubr.msk.f32.vlgmr.msra.gmra.mrb[46].mxu1 %vm420_vm0, %v2738_v14  ;;  %v771_v14 = vpop.f32.mrb[28].mxu1 }
 0x2a5   : > { %1284 = vmatprep.mubr.f32.mxu0 %v2429_v5  ;;  %2061 = vmatprep.mubr.msk.f32.mxu1 %vm420_vm0, %v2742_v17  ;;  %1023 = vst [vmem:[%s2906_s19 + $0x108] sm:$0xff] %v771_v14 }
 0x2a8   : > { %1852 = vmatmul.mubr.msk.f32.gmra.mrb[30].mxu0 %vm420_vm0, %v2742_v17  ;;  %2062 = vmatmul.mubr.msk.f32.gmra.mrb[48].mxu1 %vm420_vm0, %v2753_v20  ;;  %v773_v17 = vpop.f32.mrb[29].mxu1 }
 0x2a9   : > { %1290 = vmatprep.mubr.f32.mxu0 %v2429_v5  ;;  %2064 = vmatprep.mubr.msk.f32.mxu1 %vm420_vm0, %v2758_v21  ;;  %1024 = vst [vmem:[%s2906_s19 + $0x110] sm:$0xff] %v773_v17 }
 0x2ac   : > { %1853 = vmatmul.mubr.msk.f32.gmra.mrb[32].mxu0 %vm420_vm0, %v2753_v20  ;;  %2065 = vmatmul.mubr.msk.f32.gmra.mrb[50].mxu1 %vm420_vm0, %v2769_v6  ;;  %v777_v20 = vpop.f32.mrb[30].mxu1 }
 0x2ad   : > { %1296 = vmatprep.mubr.f32.mxu0 %v2429_v5  ;;  %2067 = vmatprep.mubr.msk.f32.mxu1 %vm420_vm0, %v2773_v24  ;;  %1026 = vst [vmem:[%s2906_s19 + $0x120] sm:$0xff] %v777_v20 }
 0x2b0   : > { %1854 = vmatmul.mubr.msk.f32.gmra.mrb[34].mxu0 %vm420_vm0, %v2758_v21  ;;  %2068 = vmatmul.mubr.msk.f32.gmra.mrb[52].mxu1 %vm420_vm0, %v2783_v26  ;;  %v779_v21 = vpop.f32.mrb[31].mxu1 }
 0x2b1   : > { %1302 = vmatprep.mubr.f32.mxu0 %v2429_v5  ;;  %2070 = vmatprep.mubr.msk.f32.mxu1 %vm420_vm0, %v2787_v27  ;;  %1027 = vst [vmem:[%s2906_s19 + $0x128] sm:$0xff] %v779_v21 }
 0x2b4   : > { %1855 = vmatmul.mubr.msk.f32.gmra.mrb[36].mxu0 %vm420_vm0, %v2769_v6  ;;  %2071 = vmatmul.mubr.msk.f32.gmra.mrb[54].mxu1 %vm420_vm0, %v2796_v29 }
 0x2b5   : > { %1308 = vmatprep.mubr.f32.mxu0 %v2429_v5  ;;  %2073 = vmatprep.mubr.msk.f32.mxu1 %vm420_vm0, %v2800_v30 }
 0x2b8   : > { %1856 = vmatmul.mubr.msk.f32.gmra.mrb[38].mxu0 %vm420_vm0, %v2773_v24  ;;  %2074 = vmatmul.mubr.msk.f32.gmra.mrb[56].mxu1 %vm420_vm0, %v2809_v31 }
 0x2b9   : > { %1314 = vmatprep.mubr.f32.mxu0 %v2429_v5  ;;  %2076 = vmatprep.mubr.msk.f32.mxu1 %vm420_vm0, %v2813_v32 }
 0x2bc   : > { %1857 = vmatmul.mubr.msk.f32.gmra.mrb[40].mxu0 %vm420_vm0, %v2783_v26  ;;  %2077 = vmatmul.mubr.msk.f32.gmra.mrb[58].mxu1 %vm420_vm0, %v2822_v34 }
 0x2bd   : > { %1320 = vmatprep.mubr.f32.mxu0 %v2429_v5  ;;  %2079 = vmatprep.mubr.msk.f32.mxu1 %vm420_vm0, %v2826_v35 }
 0x2c0   : > { %1858 = vmatmul.mubr.msk.f32.gmra.mrb[42].mxu0 %vm420_vm0, %v2787_v27  ;;  %2080 = vmatmul.mubr.msk.f32.gmra.mrb[60].mxu1 %vm420_vm0, %v2835_v38 }
 0x2c1   : > { %1326 = vmatprep.mubr.f32.mxu0 %v2429_v5  ;;  %2082 = vmatprep.mubr.msk.f32.mxu1 %vm420_vm0, %v2839_v39 }
 0x2c4   : > { %1859 = vmatmul.mubr.msk.f32.gmra.mrb[44].mxu0 %vm420_vm0, %v2796_v29  ;;  %2083 = vmatmul.mubr.msk.f32.gmra.mrb[62].mxu1 %vm420_vm0, %v2848_v41 }
 0x2c5   : > { %1332 = vmatprep.mubr.f32.mxu0 %v2429_v5  ;;  %2085 = vmatprep.mubr.msk.f32.mxu1 %vm420_vm0, %v2852_v42 }
 0x2c8   : > { %1860 = vmatmul.mubr.msk.f32.gmra.mrb[46].mxu0 %vm420_vm0, %v2800_v30  ;;  %2086 = vmatmul.mubr.msk.f32.gmra.mrb[64].mxu1 %vm420_vm0, %v2861_v43 }
 0x2c9   : > { %1338 = vmatprep.mubr.f32.mxu0 %v2429_v5 }
 0x2cc   : > { %1861 = vmatmul.mubr.msk.f32.gmra.mrb[48].mxu0 %vm420_vm0, %v2809_v31 }
 0x2cd   : > { %1344 = vmatprep.mubr.f32.mxu0 %v2429_v5 }
 0x2d0   : > { %1862 = vmatmul.mubr.msk.f32.gmra.mrb[50].mxu0 %vm420_vm0, %v2813_v32 }
 0x2d1   : > { %1350 = vmatprep.mubr.f32.mxu0 %v2429_v5 }
 0x2d4   : > { %1863 = vmatmul.mubr.msk.f32.gmra.mrb[52].mxu0 %vm420_vm0, %v2822_v34 }
 0x2d5   : > { %1356 = vmatprep.mubr.f32.mxu0 %v2429_v5 }
 0x2d8   : > { %1864 = vmatmul.mubr.msk.f32.gmra.mrb[54].mxu0 %vm420_vm0, %v2826_v35 }
 0x2d9   : > { %1362 = vmatprep.mubr.f32.mxu0 %v2429_v5 }
 0x2dc   : > { %1865 = vmatmul.mubr.msk.f32.gmra.mrb[56].mxu0 %vm420_vm0, %v2835_v38 }
 0x2dd   : > { %1368 = vmatprep.mubr.f32.mxu0 %v2429_v5 }
 0x2e0   : > { %1866 = vmatmul.mubr.msk.f32.gmra.mrb[58].mxu0 %vm420_vm0, %v2839_v39 }
 0x2e1   : > { %1374 = vmatprep.mubr.f32.mxu0 %v2429_v5 }
 0x2e4   : > { %1867 = vmatmul.mubr.msk.f32.gmra.mrb[60].mxu0 %vm420_vm0, %v2848_v41 }
 0x2e5   : > { %1380 = vmatprep.mubr.f32.mxu0 %v2429_v5 }
 0x2e8   : > { %1868 = vmatmul.mubr.msk.f32.gmra.mrb[62].mxu0 %vm420_vm0, %v2852_v42 }
 0x2e9   : > { %1386 = vmatprep.mubr.f32.mxu0 %v2429_v5  ;;  %v783_v5 = vpop.f32.mrb[32].mxu1 }
 0x2ea   : > { %1029 = vst [vmem:[%s2906_s19 + $0x138] sm:$0xff] %v783_v5  ;;  %v785_v6 = vpop.f32.mrb[33].mxu1 }
 0x2eb   : > { %1030 = vst [vmem:[%s2906_s19 + $0x140] sm:$0xff] %v785_v6  ;;  %v789_v24 = vpop.f32.mrb[34].mxu1 }
 0x2ec   : > { %1869 = vmatmul.mubr.msk.f32.gmra.mrb[64].mxu0 %vm420_vm0, %v2861_v43  ;;  %1032 = vst [vmem:[%s2906_s19 + $0x150] sm:$0xff] %v789_v24  ;;  %v791_v26 = vpop.f32.mrb[35].mxu1 }
 0x2ed   : > { %1033 = vst [vmem:[%s2906_s19 + $0x158] sm:$0xff] %v791_v26  ;;  %v795_v27 = vpop.f32.mrb[36].mxu1 }
 0x2ee   : > { %1035 = vst [vmem:[%s2906_s19 + $0x168] sm:$0xff] %v795_v27  ;;  %v797_v29 = vpop.f32.mrb[37].mxu1 }
 0x2ef   : > { %1036 = vst [vmem:[%s2906_s19 + $0x170] sm:$0xff] %v797_v29  ;;  %v801_v30 = vpop.f32.mrb[38].mxu1 }
 0x2f0   : > { %1038 = vst [vmem:[%s2906_s19 + $0x180] sm:$0xff] %v801_v30  ;;  %v803_v31 = vpop.f32.mrb[39].mxu1 }
 0x2f1   : > { %1039 = vst [vmem:[%s2906_s19 + $0x188] sm:$0xff] %v803_v31  ;;  %v807_v32 = vpop.f32.mrb[40].mxu1 }
 0x2f2   : > { %1041 = vst [vmem:[%s2906_s19 + $0x198] sm:$0xff] %v807_v32  ;;  %v809_v34 = vpop.f32.mrb[41].mxu1 }
 0x2f3   : > { %1042 = vst [vmem:[%s2906_s19 + $0x1a0] sm:$0xff] %v809_v34  ;;  %v813_v35 = vpop.f32.mrb[42].mxu1 }
 0x2f4   : > { %1044 = vst [vmem:[%s2906_s19 + $0x1b0] sm:$0xff] %v813_v35  ;;  %v815_v38 = vpop.f32.mrb[43].mxu1 }
 0x2f5   : > { %1045 = vst [vmem:[%s2906_s19 + $0x1b8] sm:$0xff] %v815_v38  ;;  %v819_v39 = vpop.f32.mrb[44].mxu1 }
 0x2f6   : > { %1047 = vst [vmem:[%s2906_s19 + $0x1c8] sm:$0xff] %v819_v39  ;;  %v821_v41 = vpop.f32.mrb[45].mxu1 }
 0x2f7   : > { %1048 = vst [vmem:[%s2906_s19 + $0x1d0] sm:$0xff] %v821_v41 }
 0x373   : > { %v1274_v42 = vpop.f32.mrb[26].mxu0 }
 0x374   : > { %1890 = vst [vmem:[%s2906_s19 + $0x1e0] sm:$0xff] %v1274_v42  ;;  %v1276_v43 = vpop.f32.mrb[27].mxu0 }
 0x375   : > { %1891 = vst [vmem:[%s2906_s19 + $0x1e8] sm:$0xff] %v1276_v43 }
 0x377   : > { %v1280_v53 = vpop.f32.mrb[28].mxu0  ;;  %v2060_v54 = vpop.f32.mrb[46].mxu1 }
 0x378   : > { %1893 = vst [vmem:[%s2906_s19 + $0x1f8] sm:$0xff] %v1280_v53  ;;  %v1282_v55 = vpop.f32.mrb[29].mxu0  ;;  %1895 = vst.msk [vmem:[%s2906_s19 + $0x208] sm:$0xff] %vm991_vm1, %v2060_v54  ;;  %v1459_v56 = vpop.f32.mrb[47].mxu1 }
 0x379   : > { %1894 = vst [vmem:[%s2906_s19 + $0x200] sm:$0xff] %v1282_v55  ;;  %1892 = vst.msk [vmem:[%s2906_s19 + $0x1f0] sm:$0xff] %vm991_vm1, %v1459_v56 }
 0x37b   : > { %v1286_v57 = vpop.f32.mrb[30].mxu0  ;;  %v2063_v58 = vpop.f32.mrb[48].mxu1 }
 0x37c   : > { %1896 = vst [vmem:[%s2906_s19 + $0x210] sm:$0xff] %v1286_v57  ;;  %v1288_v59 = vpop.f32.mrb[31].mxu0  ;;  %1901 = vst.msk [vmem:[%s2906_s19 + $0x238] sm:$0xff] %vm991_vm1, %v2063_v58  ;;  %v1469_v60 = vpop.f32.mrb[49].mxu1 }
 0x37d   : > { %1897 = vst [vmem:[%s2906_s19 + $0x218] sm:$0xff] %v1288_v59  ;;  %1898 = vst.msk [vmem:[%s2906_s19 + $0x220] sm:$0xff] %vm991_vm1, %v1469_v60 }
 0x37f   : > { %v1292_v61 = vpop.f32.mrb[32].mxu0  ;;  %v2066_v62 = vpop.f32.mrb[50].mxu1 }
 0x380   : > { %1899 = vst [vmem:[%s2906_s19 + $0x228] sm:$0xff] %v1292_v61  ;;  %v1294_v63 = vpop.f32.mrb[33].mxu0  ;;  %1907 = vst.msk [vmem:[%s2906_s19 + $0x268] sm:$0xff] %vm991_vm1, %v2066_v62  ;;  %v1479_v0 = vpop.f32.mrb[51].mxu1 }
 0x381   : > { %1900 = vst [vmem:[%s2906_s19 + $0x230] sm:$0xff] %v1294_v63  ;;  %1904 = vst.msk [vmem:[%s2906_s19 + $0x250] sm:$0xff] %vm991_vm1, %v1479_v0 }
 0x383   : > { %v1298_v1 = vpop.f32.mrb[34].mxu0  ;;  %v2069_v2 = vpop.f32.mrb[52].mxu1 }
 0x384   : > { %1902 = vst [vmem:[%s2906_s19 + $0x240] sm:$0xff] %v1298_v1  ;;  %v1300_v4 = vpop.f32.mrb[35].mxu0  ;;  %1913 = vst.msk [vmem:[%s2906_s19 + $0x298] sm:$0xff] %vm991_vm1, %v2069_v2  ;;  %v1489_v7 = vpop.f32.mrb[53].mxu1 }
 0x385   : > { %1903 = vst [vmem:[%s2906_s19 + $0x248] sm:$0xff] %v1300_v4  ;;  %1910 = vst.msk [vmem:[%s2906_s19 + $0x280] sm:$0xff] %vm991_vm1, %v1489_v7 }
 0x387   : > { %v1304_v8 = vpop.f32.mrb[36].mxu0  ;;  %v2072_v9 = vpop.f32.mrb[54].mxu1 }
 0x388   : > { %1905 = vst [vmem:[%s2906_s19 + $0x258] sm:$0xff] %v1304_v8  ;;  %v1306_v10 = vpop.f32.mrb[37].mxu0  ;;  %1919 = vst.msk [vmem:[%s2906_s19 + $0x2c8] sm:$0xff] %vm991_vm1, %v2072_v9  ;;  %v1499_v11 = vpop.f32.mrb[55].mxu1 }
 0x389   : > { %1906 = vst [vmem:[%s2906_s19 + $0x260] sm:$0xff] %v1306_v10  ;;  %1916 = vst.msk [vmem:[%s2906_s19 + $0x2b0] sm:$0xff] %vm991_vm1, %v1499_v11 }
 0x38b   : > { %v1310_v12 = vpop.f32.mrb[38].mxu0  ;;  %v2075_v13 = vpop.f32.mrb[56].mxu1 }
 0x38c   : > { %1908 = vst [vmem:[%s2906_s19 + $0x270] sm:$0xff] %v1310_v12  ;;  %v1312_v15 = vpop.f32.mrb[39].mxu0  ;;  %1925 = vst.msk [vmem:[%s2906_s19 + $0x2f8] sm:$0xff] %vm991_vm1, %v2075_v13  ;;  %v1509_v18 = vpop.f32.mrb[57].mxu1 }
 0x38d   : > { %1909 = vst [vmem:[%s2906_s19 + $0x278] sm:$0xff] %v1312_v15  ;;  %1922 = vst.msk [vmem:[%s2906_s19 + $0x2e0] sm:$0xff] %vm991_vm1, %v1509_v18 }
 0x38f   : > { %v1316_v19 = vpop.f32.mrb[40].mxu0  ;;  %v2078_v3 = vpop.f32.mrb[58].mxu1 }
 0x390   : > { %1911 = vst [vmem:[%s2906_s19 + $0x288] sm:$0xff] %v1316_v19  ;;  %v1318_v22 = vpop.f32.mrb[41].mxu0  ;;  %1931 = vst.msk [vmem:[%s2906_s19 + $0x328] sm:$0xff] %vm991_vm1, %v2078_v3  ;;  %v1519_v23 = vpop.f32.mrb[59].mxu1 }
 0x391   : > { %1912 = vst [vmem:[%s2906_s19 + $0x290] sm:$0xff] %v1318_v22  ;;  %1928 = vst.msk [vmem:[%s2906_s19 + $0x310] sm:$0xff] %vm991_vm1, %v1519_v23 }
 0x393   : > { %v1322_v25 = vpop.f32.mrb[42].mxu0  ;;  %v2081_v28 = vpop.f32.mrb[60].mxu1 }
 0x394   : > { %1914 = vst [vmem:[%s2906_s19 + $0x2a0] sm:$0xff] %v1322_v25  ;;  %v1324_v33 = vpop.f32.mrb[43].mxu0  ;;  %1937 = vst.msk [vmem:[%s2906_s19 + $0x358] sm:$0xff] %vm991_vm1, %v2081_v28  ;;  %v1529_v36 = vpop.f32.mrb[61].mxu1 }
 0x395   : > { %1915 = vst [vmem:[%s2906_s19 + $0x2a8] sm:$0xff] %v1324_v33  ;;  %1934 = vst.msk [vmem:[%s2906_s19 + $0x340] sm:$0xff] %vm991_vm1, %v1529_v36 }
 0x397   : > { %v1328_v37 = vpop.f32.mrb[44].mxu0  ;;  %v2084_v40 = vpop.f32.mrb[62].mxu1 }
 0x398   : > { %1917 = vst [vmem:[%s2906_s19 + $0x2b8] sm:$0xff] %v1328_v37  ;;  %v1330_v44 = vpop.f32.mrb[45].mxu0  ;;  %1943 = vst.msk [vmem:[%s2906_s19 + $0x388] sm:$0xff] %vm991_vm1, %v2084_v40  ;;  %v1539_v45 = vpop.f32.mrb[63].mxu1 }
 0x399   : > { %1918 = vst [vmem:[%s2906_s19 + $0x2c0] sm:$0xff] %v1330_v44  ;;  %1940 = vst.msk [vmem:[%s2906_s19 + $0x370] sm:$0xff] %vm991_vm1, %v1539_v45 }
 0x39b   : > { %v1334_v16 = vpop.f32.mrb[46].mxu0  ;;  %v2087_v46 = vpop.f32.mrb[64].mxu1 }
 0x39c   : > { %1920 = vst [vmem:[%s2906_s19 + $0x2d0] sm:$0xff] %v1334_v16  ;;  %v1336_v48 = vpop.f32.mrb[47].mxu0  ;;  %1949 = vst.msk [vmem:[%s2906_s19 + $0x3b8] sm:$0xff] %vm991_vm1, %v2087_v46  ;;  %v1549_v49 = vpop.f32.mrb[65].mxu1 }
 0x39d   : > { %1921 = vst [vmem:[%s2906_s19 + $0x2d8] sm:$0xff] %v1336_v48  ;;  %1946 = vst.msk [vmem:[%s2906_s19 + $0x3a0] sm:$0xff] %vm991_vm1, %v1549_v49 }
 0x39f   : > { %v1340_v50 = vpop.f32.mrb[48].mxu0 }
 0x3a0   : > { %1923 = vst [vmem:[%s2906_s19 + $0x2e8] sm:$0xff] %v1340_v50  ;;  %v1342_v51 = vpop.f32.mrb[49].mxu0 }
 0x3a1   : > { %1924 = vst [vmem:[%s2906_s19 + $0x2f0] sm:$0xff] %v1342_v51 }
 0x3a3   : > { %v1346_v52 = vpop.f32.mrb[50].mxu0 }
 0x3a4   : > { %1926 = vst [vmem:[%s2906_s19 + $0x300] sm:$0xff] %v1346_v52  ;;  %v1348_v47 = vpop.f32.mrb[51].mxu0 }
 0x3a5   : > { %1927 = vst [vmem:[%s2906_s19 + $0x308] sm:$0xff] %v1348_v47 }
 0x3a7   : > { %v1352_v14 = vpop.f32.mrb[52].mxu0 }
 0x3a8   : > { %1929 = vst [vmem:[%s2906_s19 + $0x318] sm:$0xff] %v1352_v14  ;;  %v1354_v17 = vpop.f32.mrb[53].mxu0 }
 0x3a9   : > { %1930 = vst [vmem:[%s2906_s19 + $0x320] sm:$0xff] %v1354_v17 }
 0x3ab   : > { %v1358_v20 = vpop.f32.mrb[54].mxu0 }
 0x3ac   : > { %1932 = vst [vmem:[%s2906_s19 + $0x330] sm:$0xff] %v1358_v20  ;;  %v1360_v21 = vpop.f32.mrb[55].mxu0 }
 0x3ad   : > { %1933 = vst [vmem:[%s2906_s19 + $0x338] sm:$0xff] %v1360_v21 }
 0x3af   : > { %v1364_v5 = vpop.f32.mrb[56].mxu0 }
 0x3b0   : > { %1935 = vst [vmem:[%s2906_s19 + $0x348] sm:$0xff] %v1364_v5  ;;  %v1366_v6 = vpop.f32.mrb[57].mxu0 }
 0x3b1   : > { %1936 = vst [vmem:[%s2906_s19 + $0x350] sm:$0xff] %v1366_v6 }
 0x3b3   : > { %v1370_v24 = vpop.f32.mrb[58].mxu0 }
 0x3b4   : > { %1938 = vst [vmem:[%s2906_s19 + $0x360] sm:$0xff] %v1370_v24  ;;  %v1372_v26 = vpop.f32.mrb[59].mxu0 }
 0x3b5   : > { %1939 = vst [vmem:[%s2906_s19 + $0x368] sm:$0xff] %v1372_v26 }
 0x3b7   : > { %v1376_v27 = vpop.f32.mrb[60].mxu0 }
 0x3b8   : > { %1941 = vst [vmem:[%s2906_s19 + $0x378] sm:$0xff] %v1376_v27  ;;  %v1378_v29 = vpop.f32.mrb[61].mxu0 }
 0x3b9   : > { %1942 = vst [vmem:[%s2906_s19 + $0x380] sm:$0xff] %v1378_v29 }
 0x3bb   : > { %v1382_v30 = vpop.f32.mrb[62].mxu0 }
 0x3bc   : > { %1944 = vst [vmem:[%s2906_s19 + $0x390] sm:$0xff] %v1382_v30  ;;  %v1384_v31 = vpop.f32.mrb[63].mxu0 }
 0x3bd   : > { %1945 = vst [vmem:[%s2906_s19 + $0x398] sm:$0xff] %v1384_v31 }
 0x3bf   : > { %v1388_v32 = vpop.f32.mrb[64].mxu0 }
 0x3c0   : > { %1947 = vst [vmem:[%s2906_s19 + $0x3a8] sm:$0xff] %v1388_v32  ;;  %v1390_v34 = vpop.f32.mrb[65].mxu0 }
 0x3c1   : > { %1948 = vst [vmem:[%s2906_s19 + $0x3b0] sm:$0xff] %v1390_v34 }
 0x3c2   : > { %s1653_s13 = sshll.u32 %s2906_s19, 4  ;;  %s2171_s18 = smul.u32 7680, %s2411_s23  ;;  %s1654_s13 = int_to_ptr.vmem [resolvable:$true] %s1653_s13 }
 0x3c3   : > { %s2430_s9 = smov 7680   ;;  %p3242_p12 = scmp.ne.s32.totalorder %s3224_s29, 0 }
 0x3c4   : > { %s1636_s6 = scalar_lea.hbm %s3213_s5, %s2171_s18  ;;  %s2431_s10 = smov 15360  }
 0x3c5   : > { %2138 = sst [smem:[#allocation13]] (%p3242_p12), %s2430_s9  ;;  %s2432_s26 = smov 20  }
 0x3c6   : > { %2139 = sst [smem:[#allocation13 + $0x1]] (%p3242_p12), %s2431_s10  ;;  %s2433_s11 = smov 384  }
 0x3c7   : > { %2140 = sst [smem:[#allocation13 + $0x2]] (%p3242_p12), %s2432_s26  ;;  %s2434_s23 = smov 24  }
 0x3c8   : > { %2141 = sst [smem:[#allocation13 + $0x3]] (%p3242_p12), %s2433_s11  ;;  %s2435_s12 = smov [#allocation12]  }
 0x3c9   : > { %2142 = sst [smem:[#allocation13 + $0x4]] (%p3242_p12), %s2433_s11  ;;  %s2436_s1 = smov 0  }
 0x3ca   : > { %2143 = sst [smem:[#allocation13 + $0x5]] (%p3242_p12), %s2434_s23 }
 0x3cb   : > { %2144 = dma.general (%p3242_p12), %s1654_s13, 15360, %s1636_s6, %s1620_s27, %s2435_s12, [#allocation13], %s2436_s1, 0  }
 0x3cc PF: > { %s1681_s14 = sand.u32 1, %s2399_s20   ;;  %p3243_p4 = scmp.ne.s32.totalorder %s3225_s30, 0 }
 0x3cd   : > { %p3244_p2 = scmp.ge.s32.totalorder %s2419_s25, 2  ;;  %s1682_s15 = scalar_lea.sflag [#allocation5], %s1681_s14 }
 0x3cf   : > { %p2161_p6 = pnand %p3244_p2, %p3243_p4 }
 0x3d1   : > { %2394 = dma.done.wait (!%p2161_p6), %s1682_s15, 15360  }
 0x3d2   : > { %2396 = vsyncadd (!%p2161_p6), %s1682_s15, 4294951936  ;;  %s22_s25 = sadd.s32 1, %s2419_s25   ;;  %s3245_s20 = smov %s2403_s21 }
 0x3d3   : > { %p19_p3 = scmp.ge.s32.totalorder %s22_s25, 4   ;;  %s3246_s21 = smov %s2407_s22 }
 0x3d4   : > { %s3247_s22 = smov %s2634_s17  ;;  %s3248_s23 = smov %s2415_s24 }
 0x3d5   : > { %s3249_s24 = smov %s3251_s7  ;;  %21 = sbr.rel (!%p19_p3) target bundleno = 10 (0xa), region = 104 }
 0x3dc   :  { %1687 = vsyncpa [#allocation4], 1 }
 0x3dd   :  { %1689 = vsyncpa [#allocation4 + $0x1], 1 }
 0x3de   :  { %1690 = vsyncpa [#allocation9], 1 }
 0x3df   :  { %1691 = vsyncpa [#allocation5], 1 }
 0x3e0   :  { %1693 = vsyncpa [#allocation5 + $0x1], 1 }
 0x3e1   :  { %1694 = vsyncpa [#allocation6], 1 }
 0x3e2   :  { %1696 = vsyncpa [#allocation6 + $0x1], 1 }

</bundles_post_ra>
